<compile_context>
chip_gen: v6e
topology: v6e:2x2x1
jax: 0.10.0
libtpu: 0.0.40
codegen_flags: <defaults>
</compile_context>

<pallas_src>
import functools
import numpy as np
import jax
import jax.numpy as jnp
from jax.experimental import pallas as pl
from jax.experimental.pallas import tpu as pltpu


# ----------------------------- small helpers -------------------------------

def _round_up(x, m):
    return (x + m - 1) // m * m


def _pick_rows(M, C, nbufs=1, budget=8 << 20):
    """Row-tile size for (M, C) slabs so `nbufs` double-buffered blocks fit VMEM."""
    cap = max(8, budget // (4 * max(C, 1) * max(nbufs, 1)))
    if M <= cap:
        return M, M                      # single full-extent block
    t = 8
    while t * 2 <= cap and M % (t * 2) == 0:
        t *= 2
    if M % t == 0:
        return t, M
    return t, _round_up(M, t)


# ----------------------------- MXU matmul (+bias) ---------------------------

def _matmul_bias_kernel(a_ref, b_ref, bias_ref, o_ref, acc_ref):
    @pl.when(pl.program_id(2) == 0)
    def _():
        acc_ref[...] = jnp.zeros_like(acc_ref)

    acc_ref[...] += jnp.dot(a_ref[...], b_ref[...],
                            preferred_element_type=jnp.float32)

    @pl.when(pl.program_id(2) == pl.num_programs(2) - 1)
    def _():
        o_ref[...] = acc_ref[...] + bias_ref[...]


def matmul_bias(a, b, bias):
    """a: (M, K); b: (Kp, Np) pre-packed bf16 weight (Kp = round_up(K, 8));
    bias: (1, Np) f32.  Returns (M, Np) f32."""
    a = a.astype(jnp.bfloat16)
    M, K = a.shape
    Kp, Np = b.shape
    # lane (N) tiling: Np is either < 128 (full extent) or a multiple of 128.
    if Np % 128 == 0:
        tn = 256 if Np % 256 == 0 else 128
    else:
        tn = Np
    # contraction (K) tiling: full-extent when it fits comfortably in VMEM.
    if Kp <= 2048:
        tk = Kp
    else:
        tk = next((t for t in (512, 384, 256, 128) if Kp % t == 0), Kp)
    # row (M) tiling.
    if M % 256 == 0:
        tm, Mp = 256, M
    elif M % 128 == 0:
        tm, Mp = 128, M
    elif M <= 256:
        tm = Mp = _round_up(M, 8)
    else:
        tm, Mp = 128, _round_up(M, 128)
    if Mp != M or Kp != K:
        a = jnp.pad(a, ((0, Mp - M), (0, Kp - K)))

    out = pl.pallas_call(
        _matmul_bias_kernel,
        out_shape=jax.ShapeDtypeStruct((Mp, Np), jnp.float32),
        grid_spec=pltpu.PrefetchScalarGridSpec(
            num_scalar_prefetch=0,
            grid=(Mp // tm, Np // tn, Kp // tk),
            in_specs=[
                pl.BlockSpec((tm, tk), lambda i, j, k: (i, k)),
                pl.BlockSpec((tk, tn), lambda i, j, k: (k, j)),
                pl.BlockSpec((1, tn), lambda i, j, k: (0, j)),
            ],
            out_specs=pl.BlockSpec((tm, tn), lambda i, j, k: (i, j)),
            scratch_shapes=[pltpu.VMEM((tm, tn), jnp.float32)],
        ),
        compiler_params=pltpu.CompilerParams(
            dimension_semantics=("parallel", "parallel", "arbitrary")),
    )(a, b, bias)
    return out[:M] if Mp != M else out


# ---------------------- direct (no-im2col) stride-1 conv --------------------

def _conv_rows_kernel(x_ref, w_ref, b_ref, o_ref, acc_ref, *, kw, dil, ow):
    di = pl.program_id(1)

    @pl.when(di == 0)
    def _():
        acc_ref[...] = jnp.zeros_like(acc_ref)

    contrib = None
    for dj in range(kw):
        a = x_ref[0, dj * dil:dj * dil + ow, :]              # (ow, Cin) bf16
        d = jnp.dot(a, w_ref[di * kw + dj],
                    preferred_element_type=jnp.float32)      # (ow, Cout) f32
        contrib = d if contrib is None else contrib + d
    acc_ref[...] += contrib

    @pl.when(di == pl.num_programs(1) - 1)
    def _():
        o_ref[0] = acc_ref[...] + b_ref[...]


def conv_rows(x, cp, dilation=1, padding=0):
    """Stride-1 k x k conv; x: (N, H, W, C) NHWC; cp packed with kind='rows'."""
    N, H, W, C = x.shape
    k = cp["k"]
    cout = cp["w"].shape[-1]
    if padding:
        x = jnp.pad(x, ((0, 0), (padding, padding), (padding, padding), (0, 0)))
    Hp, Wp = H + 2 * padding, W + 2 * padding
    oh = Hp - dilation * (k - 1)
    ow = Wp - dilation * (k - 1)
    xr = x.astype(jnp.bfloat16).reshape(N * Hp, Wp, C)

    def x_map(r, di):
        return ((r // oh) * Hp + (r % oh) + di * dilation, 0, 0)

    out = pl.pallas_call(
        functools.partial(_conv_rows_kernel, kw=k, dil=dilation, ow=ow),
        out_shape=jax.ShapeDtypeStruct((N * oh, ow, cout), jnp.float32),
        grid_spec=pltpu.PrefetchScalarGridSpec(
            num_scalar_prefetch=0,
            grid=(N * oh, k),
            in_specs=[
                pl.BlockSpec((1, Wp, C), x_map),
                pl.BlockSpec((k * k, C, cout), lambda r, di: (0, 0, 0)),
                pl.BlockSpec((1, cout), lambda r, di: (0, 0)),
            ],
            out_specs=pl.BlockSpec((1, ow, cout), lambda r, di: (r, 0, 0)),
            scratch_shapes=[pltpu.VMEM((ow, cout), jnp.float32)],
        ),
        compiler_params=pltpu.CompilerParams(
            dimension_semantics=("parallel", "arbitrary")),
    )(xr, cp["w"], cp["b"])
    return out.reshape(N, oh, ow, cout)


# ----------------------- tiled elementwise / reduction ----------------------

def _elementwise_call(kernel, row_arrays, bcast_arrays, out_dtype=jnp.float32):
    M, C = row_arrays[0].shape
    tr, Mp = _pick_rows(M, C, nbufs=len(row_arrays) + 1)
    if Mp != M:
        row_arrays = [jnp.pad(a, ((0, Mp - M), (0, 0))) for a in row_arrays]
    in_specs = ([pl.BlockSpec((tr,) + a.shape[1:], lambda i: (i, 0))
                 for a in row_arrays] +
                [pl.BlockSpec(b.shape, lambda i: (0, 0)) for b in bcast_arrays])
    out = pl.pallas_call(
        kernel,
        out_shape=jax.ShapeDtypeStruct((Mp, C), out_dtype),
        grid_spec=pltpu.PrefetchScalarGridSpec(
            num_scalar_prefetch=0,
            grid=(Mp // tr,),
            in_specs=in_specs,
            out_specs=pl.BlockSpec((tr, C), lambda i: (i, 0)),
        ),
        compiler_params=pltpu.CompilerParams(
            dimension_semantics=("parallel",)),
    )(*row_arrays, *bcast_arrays)
    return out[:M] if Mp != M else out


def _affine_kernel(x_ref, s_ref, b_ref, o_ref, *, relu):
    y = x_ref[...] * s_ref[...] + b_ref[...]
    if relu:
        y = jnp.maximum(y, 0.0)
    o_ref[...] = y


def _affine_add_kernel(x_ref, r_ref, s_ref, b_ref, o_ref, *, relu):
    y = x_ref[...] * s_ref[...] + b_ref[...] + r_ref[...]
    if relu:
        y = jnp.maximum(y, 0.0)
    o_ref[...] = y


def _sigmoid_kernel(x_ref, o_ref):
    o_ref[...] = jax.nn.sigmoid(x_ref[...])


def _lerp_kernel(a_ref, b_ref, w_ref, o_ref):
    o_ref[...] = a_ref[...] + w_ref[...] * (b_ref[...] - a_ref[...])


def _max_taps_kernel(*refs):
    out = refs[-1]
    m = refs[0][...]
    for r in refs[1:-1]:
        m = jnp.maximum(m, r[...])
    out[...] = m


def _stats_kernel(x_ref, s_ref, q_ref):
    @pl.when(pl.program_id(0) == 0)
    def _():
        s_ref[...] = jnp.zeros_like(s_ref)
        q_ref[...] = jnp.zeros_like(q_ref)
    x = x_ref[...]
    s_ref[...] += jnp.sum(x, axis=0, keepdims=True)
    q_ref[...] += jnp.sum(x * x, axis=0, keepdims=True)


def channel_sums(flat):
    """Per-channel sum / sum-of-squares of an (M, C) slab (tiled reduction)."""
    M, C = flat.shape
    tr, Mp = _pick_rows(M, C, nbufs=1, budget=4 << 20)
    if Mp != M:
        flat = jnp.pad(flat, ((0, Mp - M), (0, 0)))
    return pl.pallas_call(
        _stats_kernel,
        out_shape=(jax.ShapeDtypeStruct((1, C), jnp.float32),
                   jax.ShapeDtypeStruct((1, C), jnp.float32)),
        grid_spec=pltpu.PrefetchScalarGridSpec(
            num_scalar_prefetch=0,
            grid=(Mp // tr,),
            in_specs=[pl.BlockSpec((tr, C), lambda i: (i, 0))],
            out_specs=(pl.BlockSpec((1, C), lambda i: (0, 0)),
                       pl.BlockSpec((1, C), lambda i: (0, 0))),
        ),
        compiler_params=pltpu.CompilerParams(
            dimension_semantics=("arbitrary",)),
    )(flat)


def batchnorm_act(x, bn, act=None, residual=None, eps=1e-5):
    """Training-mode BatchNorm2d (batch stats) + optional residual add + ReLU."""
    N, H, W, C = x.shape
    M = N * H * W
    flat = x.reshape(M, C)
    s, q = channel_sums(flat)
    mean = s / M
    var = jnp.maximum(q / M - mean * mean, 0.0)
    scale = bn["gamma"].reshape(1, C) * jax.lax.rsqrt(var + eps)
    shift = bn["beta"].reshape(1, C) - mean * scale
    relu = act == "relu"
    if residual is None:
        out = _elementwise_call(functools.partial(_affine_kernel, relu=relu),
                                [flat], [scale, shift])
    else:
        out = _elementwise_call(functools.partial(_affine_add_kernel, relu=relu),
                                [flat, residual.reshape(M, C)], [scale, shift])
    return out.reshape(N, H, W, C)


def sigmoid_pl(x):
    N, H, W, C = x.shape
    out = _elementwise_call(_sigmoid_kernel, [x.reshape(N * H * W, C)], [])
    return out.reshape(N, H, W, C)


def maxpool2d(x, k=3, stride=2, pad=1):
    N, H, W, C = x.shape
    xp = jnp.pad(x, ((0, 0), (pad, pad), (pad, pad), (0, 0)),
                 constant_values=-jnp.inf)
    oh = (H + 2 * pad - k) // stride + 1
    ow = (W + 2 * pad - k) // stride + 1
    taps = [xp[:, i:i + stride * (oh - 1) + 1:stride,
               j:j + stride * (ow - 1) + 1:stride, :].reshape(N * oh * ow, C)
            for i in range(k) for j in range(k)]
    out = _elementwise_call(_max_taps_kernel, taps, [])
    return out.reshape(N, oh, ow, C)


def _gap_kernel(x_ref, o_ref, *, inv_count):
    @pl.when(pl.program_id(1) == 0)
    def _():
        o_ref[...] = jnp.zeros_like(o_ref)
    o_ref[...] += jnp.sum(x_ref[...], axis=1, keepdims=True) * inv_count


def global_avg_pool(x):
    """adaptive_avg_pool2d(x, 1) via a tiled per-batch reduction."""
    N, H, W, C = x.shape
    M = H * W
    tr, Mp = _pick_rows(M, C, nbufs=1, budget=4 << 20)
    xf = x.reshape(N, M, C)
    if Mp != M:
        xf = jnp.pad(xf, ((0, 0), (0, Mp - M), (0, 0)))
    out = pl.pallas_call(
        functools.partial(_gap_kernel, inv_count=1.0 / M),
        out_shape=jax.ShapeDtypeStruct((N, 1, C), jnp.float32),
        grid_spec=pltpu.PrefetchScalarGridSpec(
            num_scalar_prefetch=0,
            grid=(N, Mp // tr),
            in_specs=[pl.BlockSpec((1, tr, C), lambda n, j: (n, j, 0))],
            out_specs=pl.BlockSpec((1, 1, C), lambda n, j: (n, 0, 0)),
        ),
        compiler_params=pltpu.CompilerParams(
            dimension_semantics=("parallel", "arbitrary")),
    )(xf)
    return out.reshape(N, 1, 1, C)


# ----------------------- bilinear resize (align_corners=True) ---------------

def _interp_coeffs(in_size, out_size):
    if out_size == 1:
        src = np.zeros((1,), np.float32)
    elif in_size == 1:
        src = np.zeros((out_size,), np.float32)
    else:
        src = np.arange(out_size, dtype=np.float32) * (in_size - 1) / (out_size - 1)
    i0 = np.clip(np.floor(src).astype(np.int32), 0, in_size - 1)
    i1 = np.minimum(i0 + 1, in_size - 1)
    frac = (src - i0).astype(np.float32)
    return i0, i1, frac


def _lerp_axis(x, axis, out_size):
    in_size = x.shape[axis]
    i0, i1, f = _interp_coeffs(in_size, out_size)
    a = jnp.take(x, jnp.asarray(i0), axis=axis)
    b = jnp.take(x, jnp.asarray(i1), axis=axis)
    N, d1, d2, C = a.shape
    rows = N * d1 * d2
    if axis == 1:
        w = jnp.tile(jnp.repeat(jnp.asarray(f), d2), N)
    else:
        w = jnp.tile(jnp.asarray(f), N * d1)
    w = w.reshape(rows, 1)
    out = _elementwise_call(_lerp_kernel,
                            [a.reshape(rows, C), b.reshape(rows, C), w], [])
    return out.reshape(N, d1, d2, C)


def interpolate_bilinear(x, out_h, out_w):
    x = _lerp_axis(x, 1, out_h)
    x = _lerp_axis(x, 2, out_w)
    return x


# ----------------------------- conv dispatch --------------------------------

def _im2col(x, kh, kw, stride, dilation, pad):
    N, H, W, C = x.shape
    xp = jnp.pad(x, ((0, 0), (pad, pad), (pad, pad), (0, 0)))
    Hp, Wp = H + 2 * pad, W + 2 * pad
    oh = (Hp - (dilation * (kh - 1) + 1)) // stride + 1
    ow = (Wp - (dilation * (kw - 1) + 1)) // stride + 1
    patches = []
    for i in range(kh):
        for j in range(kw):
            r0, c0 = i * dilation, j * dilation
            patches.append(xp[:, r0:r0 + stride * (oh - 1) + 1:stride,
                              c0:c0 + stride * (ow - 1) + 1:stride, :])
    cols = jnp.concatenate(patches, axis=-1)
    return cols.reshape(N * oh * ow, kh * kw * C), oh, ow


def conv2d(x, cp, stride=1, dilation=1, padding=0):
    k = cp["k"]
    if k == 1:
        if stride > 1:
            x = x[:, ::stride, ::stride, :]
        N, H, W, C = x.shape
        y = matmul_bias(x.reshape(N * H * W, C), cp["w"], cp["b"])
        return y.reshape(N, H, W, -1)
    if cp["kind"] == "rows":                       # stride-1 spatial conv
        return conv_rows(x, cp, dilation=dilation, padding=padding)
    # stride > 1 spatial conv: im2col fallback (stem 7x7 + layer2 3x3).
    # TODO(synk): implicit-GEMM for strided spatial convs.
    cols, oh, ow = _im2col(x, k, k, stride, dilation, padding)
    y = matmul_bias(cols, cp["w"], cp["b"])
    return y.reshape(x.shape[0], oh, ow, -1)


def conv_transpose2d(x, cp, stride=2, padding=1, output_padding=1):
    """ConvTranspose2d via zero-dilated input + stride-1 row conv."""
    N, H, W, C = x.shape
    k = cp["k"]
    xd = jnp.zeros((N, (H - 1) * stride + 1, (W - 1) * stride + 1, C), x.dtype)
    xd = xd.at[:, ::stride, ::stride, :].set(x)
    lo = k - 1 - padding
    hi = k - 1 - padding + output_padding
    xd = jnp.pad(xd, ((0, 0), (lo, hi), (lo, hi), (0, 0)))
    return conv_rows(xd, cp, dilation=1, padding=0)


# ----------------------------- parameters (pre-packed) ----------------------

def _pack_mm(w, bias, pad_cout=None):
    """Torch (O, I, kh, kw) -> im2col/1x1 matmul weight (Kp, Np) bf16 + (1, Np) f32 bias."""
    O, I, kh, kw = w.shape
    K = kh * kw * I
    Np = pad_cout if pad_cout is not None else O
    Kp = _round_up(K, 8)
    wm = jnp.transpose(w, (2, 3, 1, 0)).reshape(K, O)
    out = jnp.zeros((Kp, Np), jnp.float32).at[:K, :O].set(wm).astype(jnp.bfloat16)
    b = jnp.zeros((1, Np), jnp.float32)
    if bias is not None:
        b = b.at[0, :O].set(bias)
    return out, b


def _pack_rows(w, bias, pad_cout=None):
    """Torch (O, I, kh, kw) -> row-conv weight (kh*kw, I, Np) bf16 + (1, Np) f32 bias."""
    O, I, kh, kw = w.shape
    Np = pad_cout if pad_cout is not None else O
    wr = jnp.transpose(w, (2, 3, 1, 0)).reshape(kh * kw, I, O)
    if Np != O:
        wr = jnp.pad(wr, ((0, 0), (0, 0), (0, Np - O)))
    b = jnp.zeros((1, Np), jnp.float32)
    if bias is not None:
        b = b.at[0, :O].set(bias)
    return wr.astype(jnp.bfloat16), b


class _ParamGen:
    def __init__(self, seed=0):
        self._key = jax.random.PRNGKey(seed)

    def _next(self):
        self._key, sub = jax.random.split(self._key)
        return sub

    def conv(self, cin, cout, k, bias=True, stride=1, pad_cout=None):
        fan_in = cin * k * k
        w = jax.random.normal(self._next(), (cout, cin, k, k), jnp.float32) / np.sqrt(fan_in)
        b = (jax.random.normal(self._next(), (cout,), jnp.float32) * 0.01) if bias else None
        if k == 1 or stride > 1:
            wm, bm = _pack_mm(w, b, pad_cout)
            return {"kind": "mm", "w": wm, "b": bm, "k": k}
        wr, br = _pack_rows(w, b, pad_cout)
        return {"kind": "rows", "w": wr, "b": br, "k": k}

    def convT(self, cin, cout, k):
        w = jax.random.normal(self._next(), (cin, cout, k, k), jnp.float32) / np.sqrt(cin * k * k)
        b = jax.random.normal(self._next(), (cout,), jnp.float32) * 0.01
        w_eq = jnp.transpose(w[:, :, ::-1, ::-1], (1, 0, 2, 3))  # (O, I, kh, kw)
        wr, br = _pack_rows(w_eq, b)
        return {"kind": "rows", "w": wr, "b": br, "k": k}

    def bn(self, c):
        return {"gamma": jnp.ones((c,), jnp.float32),
                "beta": jnp.zeros((c,), jnp.float32)}


def init_params(n_classes, seed=0):
    pg = _ParamGen(seed)
    bb = {"conv1": pg.conv(3, 64, 7, bias=False, stride=2), "bn1": pg.bn(64)}

    def make_layer(inplanes, planes, blocks, stride, dilation):
        layer, ch_in = [], inplanes
        for b in range(blocks):
            s = stride if b == 0 else 1
            blk = {
                "conv1": pg.conv(ch_in, planes, 1, bias=False), "bn1": pg.bn(planes),
                "conv2": pg.conv(planes, planes, 3, bias=False, stride=s), "bn2": pg.bn(planes),
                "conv3": pg.conv(planes, planes * 4, 1, bias=False), "bn3": pg.bn(planes * 4),
                "stride": s, "dilation": dilation,
            }
            if s != 1 or ch_in != planes * 4:
                blk["down_conv"] = pg.conv(ch_in, planes * 4, 1, bias=False)
                blk["down_bn"] = pg.bn(planes * 4)
            layer.append(blk)
            ch_in = planes * 4
        return layer

    # output_stride = 8 -> strides [1,2,1,1], dilations [1,1,2,4]
    bb["layer1"] = make_layer(64, 64, 3, 1, 1)
    bb["layer2"] = make_layer(256, 128, 4, 2, 1)
    bb["layer3"] = make_layer(512, 256, 6, 1, 2)
    bb["layer4"] = make_layer(1024, 512, 3, 1, 4)

    aspp = {
        "conv3x3_1": pg.conv(2048, 256, 3), "bn1": pg.bn(256),
        "conv3x3_2": pg.conv(2048, 256, 3), "bn2": pg.bn(256),
        "conv3x3_3": pg.conv(2048, 256, 3), "bn3": pg.bn(256),
        "conv3x3_4": pg.conv(2048, 256, 1), "bn4": pg.bn(256),
        "conv1x1_2": pg.conv(2048, 256, 1), "bn5": pg.bn(256),
        "conv1x1_1": pg.conv(256 * 5, 256, 1), "bn6": pg.bn(256),
    }

    dec = {
        "conv1": pg.conv(256, 48, 1), "norm1": pg.bn(48),
        "upconv2": pg.convT(256 + 48, 256, 3), "norm2": pg.bn(256),
        "conv3": pg.conv(256, 256, 1), "norm3": pg.bn(256),
        # keep channel dim lane-dense (padded to 128) through the tail
        "conv4": pg.conv(256, n_classes, 3, pad_cout=_round_up(n_classes, 128)),
        "n_classes": n_classes,
    }
    return {"backbone": bb, "aspp": aspp, "decoder": dec}


# ----------------------------- forward passes -------------------------------

def residual_block(x, p):
    out = conv2d(x, p["conv1"])
    out = batchnorm_act(out, p["bn1"], act="relu")
    out = conv2d(out, p["conv2"], stride=p["stride"],
                 dilation=p["dilation"], padding=p["dilation"])
    out = batchnorm_act(out, p["bn2"], act="relu")
    out = conv2d(out, p["conv3"])
    if "down_conv" in p:
        identity = conv2d(x, p["down_conv"], stride=p["stride"])
        identity = batchnorm_act(identity, p["down_bn"])
    else:
        identity = x
    # fused: relu(bn3(out) + identity)
    return batchnorm_act(out, p["bn3"], act="relu", residual=identity)


def aspp_forward(x, p, rates=(6, 12, 18)):
    x1 = conv2d(x, p["conv3x3_1"], dilation=rates[0], padding=rates[0])
    x1 = batchnorm_act(x1, p["bn1"], act="relu")
    x2 = conv2d(x, p["conv3x3_2"], dilation=rates[1], padding=rates[1])
    x2 = batchnorm_act(x2, p["bn2"], act="relu")
    x3 = conv2d(x, p["conv3x3_3"], dilation=rates[2], padding=rates[2])
    x3 = batchnorm_act(x3, p["bn3"], act="relu")
    x4 = conv2d(x, p["conv3x3_4"])
    x4 = batchnorm_act(x4, p["bn4"], act="relu")
    x6 = global_avg_pool(x)
    x6 = conv2d(x6, p["conv1x1_2"])
    x6 = batchnorm_act(x6, p["bn5"], act="relu")
    x6 = interpolate_bilinear(x6, x.shape[1], x.shape[2])
    cat = jnp.concatenate([x1, x2, x3, x4, x6], axis=-1)
    out = conv2d(cat, p["conv1x1_1"])
    return batchnorm_act(out, p["bn6"], act="relu")


def decoder_forward(x, low_level_features, p):
    llf = conv2d(low_level_features, p["conv1"])
    llf = batchnorm_act(llf, p["norm1"], act="relu")
    x = interpolate_bilinear(x, llf.shape[1], llf.shape[2])
    x = jnp.concatenate([x, llf], axis=-1)
    x = conv_transpose2d(x, p["upconv2"], stride=2, padding=1, output_padding=1)
    x = batchnorm_act(x, p["norm2"], act="relu")
    x = conv2d(x, p["conv3"])
    x = batchnorm_act(x, p["norm3"], act="relu")
    x = conv2d(x, p["conv4"], padding=1)            # channels padded to 128
    tgt = x.shape[2] * 2                            # F.interpolate(x, W*2)
    x = interpolate_bilinear(x, tgt, tgt)           # lane-dense upsample
    x = sigmoid_pl(x)                               # lane-dense sigmoid
    return x[..., :p["n_classes"]]                  # slice to n_classes last


def deeplabv3plus_forward(params, x_nchw):
    x = jnp.transpose(x_nchw, (0, 2, 3, 1)).astype(jnp.float32)  # NCHW -> NHWC
    bb = params["backbone"]
    x = conv2d(x, bb["conv1"], stride=2, padding=3)
    x = batchnorm_act(x, bb["bn1"], act="relu")
    x = maxpool2d(x, 3, 2, 1)
    for blk in bb["layer1"]:
        x = residual_block(x, blk)
    low_level_features = x
    for name in ("layer2", "layer3", "layer4"):
        for blk in bb[name]:
            x = residual_block(x, blk)
    x = aspp_forward(x, params["aspp"])
    x = decoder_forward(x, low_level_features, params["decoder"])
    return jnp.transpose(x, (0, 3, 1, 2))  # NHWC -> NCHW


# ----------------------------- main -----------------------------------------

if __name__ == "__main__":
    n_classes = 3
    key = jax.random.PRNGKey(0)
    x = jax.random.normal(key, (2, 3, 32, 32), jnp.float32)  # NCHW like PyTorch
    params = init_params(n_classes=n_classes, seed=0)
    out = deeplabv3plus_forward(params, x)
    out = jax.block_until_ready(out)
    assert out.shape == (2, n_classes, 32, 32), out.shape
    assert bool(jnp.all(jnp.isfinite(out)))
    assert bool(jnp.all((out >= 0.0) & (out <= 1.0)))
    print("KERNEL_OK")
</pallas_src>

<mosaic_0001>
module attributes {stable_mosaic.version = 11 : i64} {
  func.func @_matmul_bias_kernel(%arg0: i32, %arg1: i32, %arg2: i32, %arg3: memref<256x152xbf16, #tpu.memory_space<vmem>>, %arg4: memref<152x64xbf16, #tpu.memory_space<vmem>>, %arg5: memref<1x64xf32, #tpu.memory_space<vmem>>, %arg6: memref<256x64xf32, #tpu.memory_space<vmem>>, %arg7: memref<256x64xf32, #tpu.memory_space<vmem>>) attributes {dimension_semantics = [#tpu.dimension_semantics<parallel>, #tpu.dimension_semantics<parallel>, #tpu.dimension_semantics<arbitrary>], iteration_bounds = array<i64: 2, 1, 1>, scalar_prefetch = 0 : i64, scratch_operands = 1 : i64, tpu.core_type = #tpu.core_type<tc>, window_params = [{transform_indices = @transform_0, window_bounds = array<i64: 256, 152>}, {transform_indices = @transform_1, window_bounds = array<i64: 152, 64>}, {transform_indices = @transform_2, window_bounds = array<i64: 1, 64>}, {transform_indices = @transform_3, window_bounds = array<i64: 256, 64>}]} {
    %c0_i32 = arith.constant 0 : i32
    %0 = arith.cmpi eq, %arg2, %c0_i32 : i32
    %1 = arith.extui %0 : i1 to i32
    %c0_i32_0 = arith.constant 0 : i32
    %2 = arith.cmpi ne, %1, %c0_i32_0 : i32
    scf.if %2 {
      %cst_10 = arith.constant 0.000000e+00 : f32
      %12 = vector.broadcast %cst_10 : f32 to vector<256x64xf32>
      %c0_11 = arith.constant 0 : index
      %c0_12 = arith.constant 0 : index
      %13 = vector.load %arg7[%c0_11, %c0_12] : memref<256x64xf32, #tpu.memory_space<vmem>>, vector<256x64xf32>
      tpu.vector_store %arg7[%c0_11, %c0_12], %12 {strides = array<i32>} : memref<256x64xf32, #tpu.memory_space<vmem>>, vector<256x64xf32>,
    } else {
    }
    %c0 = arith.constant 0 : index
    %c0_1 = arith.constant 0 : index
    %3 = vector.load %arg7[%c0, %c0_1] : memref<256x64xf32, #tpu.memory_space<vmem>>, vector<256x64xf32>
    %c0_2 = arith.constant 0 : index
    %c0_3 = arith.constant 0 : index
    %4 = vector.load %arg3[%c0_2, %c0_3] : memref<256x152xbf16, #tpu.memory_space<vmem>>, vector<256x152xbf16>
    %c0_4 = arith.constant 0 : index
    %c0_5 = arith.constant 0 : index
    %5 = vector.load %arg4[%c0_4, %c0_5] : memref<152x64xbf16, #tpu.memory_space<vmem>>, vector<152x64xbf16>
    %cst = arith.constant dense<0.000000e+00> : vector<256x64xf32>
    %6 = tpu.matmul %4, %5, %cst {dimension_numbers = #tpu.dot_dimension_numbers<[1], [0], [0], [1], [0, 0, 1, 1], [], []>} : vector<256x152xbf16>, vector<152x64xbf16>, vector<256x64xf32> -> vector<256x64xf32>
    %7 = arith.addf %3, %6 : vector<256x64xf32>
    %c0_6 = arith.constant 0 : index
    %c0_7 = arith.constant 0 : index
    %8 = vector.load %arg7[%c0_6, %c0_7] : memref<256x64xf32, #tpu.memory_space<vmem>>, vector<256x64xf32>
    tpu.vector_store %arg7[%c0_6, %c0_7], %7 {strides = array<i32>} : memref<256x64xf32, #tpu.memory_space<vmem>>, vector<256x64xf32>,
    %c0_i32_8 = arith.constant 0 : i32
    %9 = arith.cmpi eq, %arg2, %c0_i32_8 : i32
    %10 = arith.extui %9 : i1 to i32
    %c0_i32_9 = arith.constant 0 : i32
    %11 = arith.cmpi ne, %10, %c0_i32_9 : i32
    scf.if %11 {
      %c0_10 = arith.constant 0 : index
      %c0_11 = arith.constant 0 : index
      %12 = vector.load %arg7[%c0_10, %c0_11] : memref<256x64xf32, #tpu.memory_space<vmem>>, vector<256x64xf32>
      %c0_12 = arith.constant 0 : index
      %c0_13 = arith.constant 0 : index
      %13 = vector.load %arg5[%c0_12, %c0_13] : memref<1x64xf32, #tpu.memory_space<vmem>>, vector<1x64xf32>
      %14 = vector.broadcast %13 : vector<1x64xf32> to vector<256x64xf32>
      %15 = arith.addf %12, %14 : vector<256x64xf32>
      %c0_14 = arith.constant 0 : index
      %c0_15 = arith.constant 0 : index
      %16 = vector.load %arg6[%c0_14, %c0_15] : memref<256x64xf32, #tpu.memory_space<vmem>>, vector<256x64xf32>
      tpu.vector_store %arg6[%c0_14, %c0_15], %15 {strides = array<i32>} : memref<256x64xf32, #tpu.memory_space<vmem>>, vector<256x64xf32>,
    } else {
    }
    return
  }
  func.func @transform_0(%arg0: i32, %arg1: i32, %arg2: i32) -> (i32, i32) {
    %c0_i32 = arith.constant 0 : i32
    return %arg0, %arg2 : i32, i32
  }
  func.func @transform_1(%arg0: i32, %arg1: i32, %arg2: i32) -> (i32, i32) {
    %c0_i32 = arith.constant 0 : i32
    return %arg2, %arg1 : i32, i32
  }
  func.func @transform_2(%arg0: i32, %arg1: i32, %arg2: i32) -> (i32, i32) {
    %c0_i32 = arith.constant 0 : i32
    %c0_i32_0 = arith.constant 0 : i32
    return %c0_i32, %arg1 : i32, i32
  }
  func.func @transform_3(%arg0: i32, %arg1: i32, %arg2: i32) -> (i32, i32) {
    %c0_i32 = arith.constant 0 : i32
    return %arg0, %arg1 : i32, i32
  }
}

</mosaic_0001>

<bundles_post_ra>
// kernel: tpu_custom_call.1
= control target key start
LH: loop header
LB: loop body
LE: loop exit
PB: predicated region body
PF: predicated region fallthrough
CT: control target
= control target key end

     0   :  { %s1312_s12 = smov 0   ;;  %s1314_s13 = smov 0   ;;  %s1619_s0 = inlined_call_operand.vmem [shape: bf16[512,152], index: 0, kind: input, shape index: {}]   ;;  %s1620_s1 = inlined_call_operand.vmem [shape: bf16[152,64], index: 1, kind: input, shape index: {}]   ;;  %s1621_s2 = inlined_call_operand.vmem [shape: f32[1,64], index: 2, kind: input, shape index: {}]   ;;  %s1622_s3 = inlined_call_operand.vmem [shape: f32[512,64], index: 3, kind: output, shape index: {}]  }
   0x1   :  { %s1316_s14 = smov 0  }
   0x2 LB: > { %s32_s15 = sadd.s32 1, %s1284_s13  ;;  %p1094_p0 = scmp.ge.s32.totalorder %s1288_s14, 1  ;;  %s1288_s14 = sphi %s1316_s14, %s13_s14   ;;  %s1284_s13 = sphi %s1314_s13, %s1624_s13   ;;  %s1280_s12 = sphi %s1312_s12, %s1623_s12  }
   0x3   : > { %p34_p1 = scmp.ge.s32.totalorder %s32_s15, 2  ;;  %p191_p2 = scmp.lt.s32.totalorder %s1288_s14, 3 }
   0x5   : > { %s1626_s15 = smov (%p34_p1, %s32_s15), 0  ;;  %p192_p3 = pnand %p1094_p0, %p191_p2 }
   0x6   : > { %s1095_s20 = sshll.u32 (!%p192_p3), %s1280_s12, 5 }
   0x7   : > { %195 = sbr.rel (%p192_p3) target bundleno = 320 (0x140), region = 32  ;;  %p236_p4 = scmp.lt.s32.totalorder (!%p192_p3), %s1095_s20, 63 }
   0xc   : > { %v1208_v0 = vld [vmem:[%s1620_s1 + $0x38] sm:$0xff]   ;;  %v1290_v1 = vmov 0   ;;  %v1209_v2 = vld [vmem:[%s1620_s1 + $0x30] sm:$0xff]   ;;  %s1628_s20 = smov (!%p236_p4, %s1095_s20), 63  ;;  %v1210_v3 = vld [vmem:[%s1620_s1 + $0x28] sm:$0xff]   ;;  %vm272_vm0 = vcmask 523264  }
   0xd   : > { %642 = vmatprep.subr.bf16.mxu0 %v1290_v1  ;;  %1162 = vmatprep.subr.bf16.mxu1 %v1290_v1  ;;  %s1161_s23 = sshll.u32 %s1628_s20, 3  ;;  %vm589_vm1 = vcmask 195584   ;;  %v1211_v4 = vld [vmem:[%s1620_s1 + $0x20] sm:$0xff]   ;;  %v1291_v6 = vmov 0.0   ;;  %v1212_v8 = vld [vmem:[%s1620_s1 + $0x18] sm:$0xff]   ;;  %v1213_v9 = vld [vmem:[%s1620_s1 + $0x10] sm:$0xff]  }
   0xe   : > { %643 = vmatpush1.bf16.msra.mxu0 %v1208_v0  ;;  %1172 = vmatpush1.bf16.msra.mxu1 %v1208_v0  ;;  %s1353_s26 = scalar_lea.vmem %s1619_s0, %s1161_s23  ;;  %273 = vst.msk [vmem:[#allocation2] sm:$0xff] %vm272_vm0, %v1291_v6  ;;  %274 = vst.msk [vmem:[#allocation2 + $0x8] sm:$0xff] %vm272_vm0, %v1291_v6  ;;  %v1214_v10 = vld [vmem:[%s1620_s1 + $0x8] sm:$0xff]   ;;  %v1215_v11 = vld [vmem:[%s1620_s1] sm:$0xff]   ;;  %vm638_vm2 = vcmask 1043456   ;;  %s1484_s22 = scalar_lea.vmem %s1622_s3, %s1161_s23 }
   0xf   : > { %644 = vmatprep.subr.bf16.mxu0 %v1290_v1  ;;  %1163 = vmatprep.subr.bf16.mxu1 %v1290_v1  ;;  %v1220_v5 = vld [vmem:[%s1353_s26 + $0x4] ss:$8 sps:$4 sm:$0xff]   ;;  %275 = vst.msk [vmem:[#allocation2 + $0x10] sm:$0xff] %vm272_vm0, %v1291_v6  ;;  %276 = vst.msk [vmem:[#allocation2 + $0x18] sm:$0xff] %vm272_vm0, %v1291_v6  ;;  %v1216_v12 = vld [vmem:[%s1620_s1 + $0x48] ss:$0 sps:$4 sm:$0xff]  }
  0x10   : > { %277 = vst.msk [vmem:[#allocation2 + $0x20] sm:$0xff] %vm272_vm0, %v1291_v6  ;;  %278 = vst.msk [vmem:[#allocation2 + $0x28] sm:$0xff] %vm272_vm0, %v1291_v6  ;;  %1142 = vmatprep.mubr.msk.bf16.mxu0 %vm589_vm1, %v1220_v5  ;;  %v1223_v7 = vld [vmem:[%s1353_s26 + $0x84] ss:$8 sps:$4 sm:$0xff]   ;;  %v640_v13 = vsel %vm638_vm2, %v1216_v12, 0 }
  0x11   : > { %279 = vst.msk [vmem:[#allocation2 + $0x30] sm:$0xff] %vm272_vm0, %v1291_v6  ;;  %280 = vst.msk [vmem:[#allocation2 + $0x38] sm:$0xff] %vm272_vm0, %v1291_v6  ;;  %1150 = vmatprep.mubr.msk.bf16.mxu1 %vm589_vm1, %v1223_v7  ;;  %v1217_v14 = vld [vmem:[%s1620_s1 + $0x40] sm:$0xff]   ;;  %v1224_v17 = vld [vmem:[%s1353_s26 + $0x14] ss:$8 sps:$4 sm:$0xff]  }
  0x12   : > { %645 = vmatpush1.bf16.msra.mxu0 %v1209_v2  ;;  %1173 = vmatpush1.bf16.msra.mxu1 %v1209_v2  ;;  %281 = vst.msk [vmem:[#allocation2 + $0x40] sm:$0xff] %vm272_vm0, %v1291_v6  ;;  %282 = vst.msk [vmem:[#allocation2 + $0x48] sm:$0xff] %vm272_vm0, %v1291_v6  ;;  %v1218_v15 = vld [vmem:[%s1353_s26] ss:$8 sps:$4 sm:$0xff]   ;;  %v1226_v18 = vld [vmem:[%s1353_s26 + $0x94] ss:$8 sps:$4 sm:$0xff]  }
  0x13   : > { %646 = vmatprep.subr.bf16.mxu0 %v1290_v1  ;;  %1164 = vmatprep.subr.bf16.mxu1 %v1290_v1  ;;  %283 = vst.msk [vmem:[#allocation2 + $0x50] sm:$0xff] %vm272_vm0, %v1291_v6  ;;  %284 = vst.msk [vmem:[#allocation2 + $0x58] sm:$0xff] %vm272_vm0, %v1291_v6  ;;  %v1221_v16 = vld [vmem:[%s1353_s26 + $0x80] ss:$8 sps:$4 sm:$0xff]   ;;  %v1228_v19 = vld [vmem:[%s1353_s26 + $0x10] ss:$8 sps:$4 sm:$0xff]  }
  0x14   : > { %285 = vst.msk [vmem:[#allocation2 + $0x60] sm:$0xff] %vm272_vm0, %v1291_v6  ;;  %286 = vst.msk [vmem:[#allocation2 + $0x68] sm:$0xff] %vm272_vm0, %v1291_v6  ;;  %v1229_v20 = vld [vmem:[%s1353_s26 + $0x90] ss:$8 sps:$4 sm:$0xff]   ;;  %v1230_v21 = vld [vmem:[%s1353_s26 + $0x24] ss:$8 sps:$4 sm:$0xff]  }
  0x15   : > { %287 = vst.msk [vmem:[#allocation2 + $0x70] sm:$0xff] %vm272_vm0, %v1291_v6  ;;  %288 = vst.msk [vmem:[#allocation2 + $0x78] sm:$0xff] %vm272_vm0, %v1291_v6  ;;  %v1232_v22 = vld [vmem:[%s1353_s26 + $0xa4] ss:$8 sps:$4 sm:$0xff]   ;;  %v1234_v23 = vld [vmem:[%s1353_s26 + $0x20] ss:$8 sps:$4 sm:$0xff]  }
  0x16   : > { %647 = vmatpush1.bf16.msra.mxu0 %v1210_v3  ;;  %1174 = vmatpush1.bf16.msra.mxu1 %v1210_v3  ;;  %289 = vst.msk [vmem:[#allocation2 + $0x80] sm:$0xff] %vm272_vm0, %v1291_v6  ;;  %290 = vst.msk [vmem:[#allocation2 + $0x88] sm:$0xff] %vm272_vm0, %v1291_v6  ;;  %v1235_v24 = vld [vmem:[%s1353_s26 + $0xa0] ss:$8 sps:$4 sm:$0xff]   ;;  %v1236_v25 = vld [vmem:[%s1353_s26 + $0x34] ss:$8 sps:$4 sm:$0xff]  }
  0x17   : > { %291 = vst.msk [vmem:[#allocation2 + $0x90] sm:$0xff] %vm272_vm0, %v1291_v6  ;;  %292 = vst.msk [vmem:[#allocation2 + $0x98] sm:$0xff] %vm272_vm0, %v1291_v6  ;;  %648 = vmatprep.subr.bf16.mxu0 %v1290_v1  ;;  %1165 = vmatprep.subr.bf16.mxu1 %v1290_v1  ;;  %v1238_v26 = vld [vmem:[%s1353_s26 + $0xb4] ss:$8 sps:$4 sm:$0xff]   ;;  %v1240_v27 = vld [vmem:[%s1353_s26 + $0x30] ss:$8 sps:$4 sm:$0xff]  }
  0x18   : > { %293 = vst.msk [vmem:[#allocation2 + $0xa0] sm:$0xff] %vm272_vm0, %v1291_v6  ;;  %294 = vst.msk [vmem:[#allocation2 + $0xa8] sm:$0xff] %vm272_vm0, %v1291_v6  ;;  %v1241_v28 = vld [vmem:[%s1353_s26 + $0xb0] ss:$8 sps:$4 sm:$0xff]   ;;  %v1242_v29 = vld [vmem:[%s1353_s26 + $0x44] ss:$8 sps:$4 sm:$0xff]  }
  0x19   : > { %295 = vst.msk [vmem:[#allocation2 + $0xb0] sm:$0xff] %vm272_vm0, %v1291_v6  ;;  %296 = vst.msk [vmem:[#allocation2 + $0xb8] sm:$0xff] %vm272_vm0, %v1291_v6  ;;  %v1244_v30 = vld [vmem:[%s1353_s26 + $0xc4] ss:$8 sps:$4 sm:$0xff]   ;;  %v1246_v31 = vld [vmem:[%s1353_s26 + $0x40] ss:$8 sps:$4 sm:$0xff]  }
  0x1a   : > { %297 = vst.msk [vmem:[#allocation2 + $0xc0] sm:$0xff] %vm272_vm0, %v1291_v6  ;;  %298 = vst.msk [vmem:[#allocation2 + $0xc8] sm:$0xff] %vm272_vm0, %v1291_v6  ;;  %649 = vmatpush1.bf16.msra.mxu0 %v1211_v4  ;;  %1175 = vmatpush1.bf16.msra.mxu1 %v1211_v4  ;;  %v1247_v32 = vld [vmem:[%s1353_s26 + $0xc0] ss:$8 sps:$4 sm:$0xff]   ;;  %v1248_v33 = vld [vmem:[%s1353_s26 + $0x54] ss:$8 sps:$4 sm:$0xff]  }
  0x1b   : > { %299 = vst.msk [vmem:[#allocation2 + $0xd0] sm:$0xff] %vm272_vm0, %v1291_v6  ;;  %300 = vst.msk [vmem:[#allocation2 + $0xd8] sm:$0xff] %vm272_vm0, %v1291_v6  ;;  %650 = vmatprep.subr.bf16.mxu0 %v1290_v1  ;;  %1166 = vmatprep.subr.bf16.mxu1 %v1290_v1  ;;  %v1250_v34 = vld [vmem:[%s1353_s26 + $0xd4] ss:$8 sps:$4 sm:$0xff]   ;;  %v1252_v35 = vld [vmem:[%s1353_s26 + $0x50] ss:$8 sps:$4 sm:$0xff]  }
  0x1c   : > { %301 = vst.msk [vmem:[#allocation2 + $0xe0] sm:$0xff] %vm272_vm0, %v1291_v6  ;;  %302 = vst.msk [vmem:[#allocation2 + $0xe8] sm:$0xff] %vm272_vm0, %v1291_v6  ;;  %v1253_v36 = vld [vmem:[%s1353_s26 + $0xd0] ss:$8 sps:$4 sm:$0xff]   ;;  %v1254_v37 = vld [vmem:[%s1353_s26 + $0x64] ss:$8 sps:$4 sm:$0xff]  }
  0x1d   : > { %303 = vst.msk [vmem:[#allocation2 + $0xf0] sm:$0xff] %vm272_vm0, %v1291_v6  ;;  %304 = vst.msk [vmem:[#allocation2 + $0xf8] sm:$0xff] %vm272_vm0, %v1291_v6  ;;  %v1256_v38 = vld [vmem:[%s1353_s26 + $0xe4] ss:$8 sps:$4 sm:$0xff]   ;;  %v1258_v39 = vld [vmem:[%s1353_s26 + $0x60] ss:$8 sps:$4 sm:$0xff]  }
  0x1e   : > { %651 = vmatpush1.bf16.msra.mxu0 %v1212_v8  ;;  %1176 = vmatpush1.bf16.msra.mxu1 %v1212_v8  ;;  %v1259_v40 = vld [vmem:[%s1353_s26 + $0xe0] ss:$8 sps:$4 sm:$0xff]   ;;  %v1260_v41 = vld [vmem:[%s1353_s26 + $0x74] ss:$8 sps:$4 sm:$0xff]   ;;  %v1264_v43 = vld [vmem:[%s1353_s26 + $0x70] ss:$8 sps:$4 sm:$0xff]  }
  0x1f   : > { %652 = vmatprep.subr.bf16.mxu0 %v1290_v1  ;;  %1167 = vmatprep.subr.bf16.mxu1 %v1290_v1  ;;  %v1262_v42 = vld [vmem:[%s1353_s26 + $0xf4] ss:$8 sps:$4 sm:$0xff]   ;;  %v1265_v44 = vld [vmem:[%s1353_s26 + $0xf0] ss:$8 sps:$4 sm:$0xff]   ;;  %v305_v45 = vld [vmem:[#allocation2] sm:$0xff] }
  0x20   : > { %v321_v46 = vld [vmem:[#allocation2 + $0x80] sm:$0xff]  ;;  %v306_v53 = vld [vmem:[#allocation2 + $0x8] sm:$0xff]  ;;  %v307_v61 = vld [vmem:[#allocation2 + $0x10] sm:$0xff] }
  0x21   : > { %v322_v54 = vld [vmem:[#allocation2 + $0x88] sm:$0xff]  ;;  %v323_v62 = vld [vmem:[#allocation2 + $0x90] sm:$0xff]  ;;  %v1477_v63 = vld [vmem:[%s1621_s2] ss:$0 sm:$0xff] }
  0x22   : > { %653 = vmatpush1.bf16.msra.mxu0 %v1213_v9  ;;  %1177 = vmatpush1.bf16.msra.mxu1 %v1213_v9  ;;  %v308_v4 = vld [vmem:[#allocation2 + $0x18] sm:$0xff] }
  0x23   : > { %654 = vmatprep.subr.bf16.mxu0 %v1290_v1  ;;  %1168 = vmatprep.subr.bf16.mxu1 %v1290_v1  ;;  %v324_v9 = vld [vmem:[#allocation2 + $0x98] sm:$0xff] }
  0x26   : > { %655 = vmatpush1.bf16.msra.mxu0 %v1214_v10  ;;  %1178 = vmatpush1.bf16.msra.mxu1 %v1214_v10 }
  0x27   : > { %656 = vmatprep.subr.bf16.mxu0 %v1290_v1  ;;  %1169 = vmatprep.subr.bf16.mxu1 %v1290_v1 }
  0x2a   : > { %657 = vmatpush1.bf16.msra.mxu0 %v1215_v11  ;;  %1179 = vmatpush1.bf16.msra.mxu1 %v1215_v11 }
  0x2b   : > { %670 = vmatprep.subr.bf16.mxu0 %v1290_v1  ;;  %1170 = vmatprep.subr.bf16.mxu1 %v1290_v1 }
  0x2e   : > { %671 = vmatpush2.bf16.msra.mxu0 %v640_v13  ;;  %1180 = vmatpush2.bf16.msra.mxu1 %v640_v13 }
  0x2f   : > { %672 = vmatprep.subr.bf16.mxu0 %v1290_v1  ;;  %1171 = vmatprep.subr.bf16.mxu1 %v1290_v1 }
  0x32   : > { %673 = vmatpush2.bf16.msra.mxu0 %v1217_v14  ;;  %1181 = vmatpush2.bf16.msra.mxu1 %v1217_v14 }
  0x35   : > { %675 = vmatmul.mubr.bf16.vlgmr.msra.gmra.mxu0 %v1218_v15  ;;  %739 = vmatmul.mubr.bf16.vlgmr.msra.gmra.mxu1 %v1221_v16  ;;  %v309_v16 = vld [vmem:[#allocation2 + $0x20] sm:$0xff] }
  0x36   : > { %1143 = vmatprep.mubr.msk.bf16.mxu0 %vm589_vm1, %v1224_v17  ;;  %1151 = vmatprep.mubr.msk.bf16.mxu1 %vm589_vm1, %v1226_v18 }
  0x3d   : > { %683 = vmatmul.mubr.bf16.gmra.mxu0 %v1228_v19  ;;  %747 = vmatmul.mubr.bf16.gmra.mxu1 %v1229_v20 }
  0x3e   : > { %1144 = vmatprep.mubr.msk.bf16.mxu0 %vm589_vm1, %v1230_v21  ;;  %1152 = vmatprep.mubr.msk.bf16.mxu1 %vm589_vm1, %v1232_v22  ;;  %v325_v21 = vld [vmem:[#allocation2 + $0xa0] sm:$0xff] }
  0x45   : > { %691 = vmatmul.mubr.bf16.gmra.mxu0 %v1234_v23  ;;  %755 = vmatmul.mubr.bf16.gmra.mxu1 %v1235_v24 }
  0x46   : > { %1145 = vmatprep.mubr.msk.bf16.mxu0 %vm589_vm1, %v1236_v25  ;;  %1153 = vmatprep.mubr.msk.bf16.mxu1 %vm589_vm1, %v1238_v26 }
  0x4d   : > { %699 = vmatmul.mubr.bf16.gmra.mxu0 %v1240_v27  ;;  %763 = vmatmul.mubr.bf16.gmra.mxu1 %v1241_v28  ;;  %v310_v28 = vld [vmem:[#allocation2 + $0x28] sm:$0xff] }
  0x4e   : > { %1146 = vmatprep.mubr.msk.bf16.mxu0 %vm589_vm1, %v1242_v29  ;;  %1154 = vmatprep.mubr.msk.bf16.mxu1 %vm589_vm1, %v1244_v30 }
  0x55   : > { %707 = vmatmul.mubr.bf16.gmra.mxu0 %v1246_v31  ;;  %771 = vmatmul.mubr.bf16.gmra.mxu1 %v1247_v32 }
  0x56   : > { %1147 = vmatprep.mubr.msk.bf16.mxu0 %vm589_vm1, %v1248_v33  ;;  %1155 = vmatprep.mubr.msk.bf16.mxu1 %vm589_vm1, %v1250_v34  ;;  %v326_v33 = vld [vmem:[#allocation2 + $0xa8] sm:$0xff] }
  0x5d   : > { %715 = vmatmul.mubr.bf16.gmra.mxu0 %v1252_v35  ;;  %779 = vmatmul.mubr.bf16.gmra.mxu1 %v1253_v36 }
  0x5e   : > { %1148 = vmatprep.mubr.msk.bf16.mxu0 %vm589_vm1, %v1254_v37  ;;  %1156 = vmatprep.mubr.msk.bf16.mxu1 %vm589_vm1, %v1256_v38 }
  0x65   : > { %723 = vmatmul.mubr.bf16.gmra.mxu0 %v1258_v39  ;;  %787 = vmatmul.mubr.bf16.gmra.mxu1 %v1259_v40  ;;  %v311_v40 = vld [vmem:[#allocation2 + $0x30] sm:$0xff] }
  0x66   : > { %1149 = vmatprep.mubr.msk.bf16.mxu0 %vm589_vm1, %v1260_v41  ;;  %1157 = vmatprep.mubr.msk.bf16.mxu1 %vm589_vm1, %v1262_v42 }
  0x6d   : > { %731 = vmatmul.mubr.bf16.gmra.mxu0 %v1264_v43  ;;  %795 = vmatmul.mubr.bf16.gmra.mxu1 %v1265_v44 }
  0xf5   : > { %v676_v47 = vpop.f32.mrf.mxu0  ;;  %v740_v48 = vpop.f32.mrf.mxu1 }
  0xf6   : > { %v803_v49 = vadd.f32 %v676_v47, %v305_v45  ;;  %v819_v50 = vadd.f32 %v740_v48, %v321_v46  ;;  %v327_v45 = vld [vmem:[#allocation2 + $0xb0] sm:$0xff] }
  0xf7   : > { %v678_v51 = vpop.f32.mrf.mxu0  ;;  %v742_v52 = vpop.f32.mrf.mxu1 }
  0xf8   : > { %836 = vst.msk [vmem:[#allocation2] sm:$0xff] %vm272_vm0, %v803_v49  ;;  %852 = vst.msk [vmem:[#allocation2 + $0x80] sm:$0xff] %vm272_vm0, %v819_v50  ;;  %v312_v52 = vld [vmem:[#allocation2 + $0x38] sm:$0xff] }
  0xf9   : > { %v679_v55 = vpop.f32.mrf.mxu0  ;;  %v743_v56 = vpop.f32.mrf.mxu1 }
  0xfa   : > { %v804_v57 = vadd.f32 %v679_v55, %v306_v53  ;;  %v820_v58 = vadd.f32 %v743_v56, %v322_v54 }
  0xfb   : > { %v681_v59 = vpop.f32.mrf.mxu0  ;;  %v745_v60 = vpop.f32.mrf.mxu1 }
  0xfc   : > { %837 = vst.msk [vmem:[#allocation2 + $0x8] sm:$0xff] %vm272_vm0, %v804_v57  ;;  %853 = vst.msk [vmem:[#allocation2 + $0x88] sm:$0xff] %vm272_vm0, %v820_v58  ;;  %v328_v57 = vld [vmem:[#allocation2 + $0xb8] sm:$0xff] }
  0xfd   : > { %v684_v0 = vpop.f32.mrf.mxu0  ;;  %v748_v1 = vpop.f32.mrf.mxu1 }
  0xfe   : > { %v805_v2 = vadd.f32 %v684_v0, %v307_v61  ;;  %v821_v3 = vadd.f32 %v748_v1, %v323_v62  ;;  %v313_v1 = vld [vmem:[#allocation2 + $0x40] sm:$0xff] }
  0xff   : > { %v871_v5 = vld [vmem:[#allocation2] sm:$0xff]  ;;  %v686_v7 = vpop.f32.mrf.mxu0  ;;  %v750_v8 = vpop.f32.mrf.mxu1 }
 0x100   : > { %v887_v6 = vld [vmem:[#allocation2 + $0x80] sm:$0xff]  ;;  %v910_v10 = vadd.f32 %v1477_v63, %v871_v5  ;;  %838 = vst.msk [vmem:[#allocation2 + $0x10] sm:$0xff] %vm272_vm0, %v805_v2  ;;  %854 = vst.msk [vmem:[#allocation2 + $0x90] sm:$0xff] %vm272_vm0, %v821_v3 }
 0x101   : > { %v926_v11 = vadd.f32 %v1477_v63, %v887_v6  ;;  %v687_v12 = vpop.f32.mrf.mxu0  ;;  %v751_v13 = vpop.f32.mrf.mxu1  ;;  %v329_v6 = vld [vmem:[#allocation2 + $0xc0] sm:$0xff] }
 0x102   : > { %942 = vst.msk [vmem:[%s1484_s22] sm:$0xff] %vm272_vm0, %v910_v10  ;;  %v806_v14 = vadd.f32 %v687_v12, %v308_v4  ;;  %v822_v15 = vadd.f32 %v751_v13, %v324_v9  ;;  %v314_v13 = vld [vmem:[#allocation2 + $0x48] sm:$0xff] }
 0x103   : > { %958 = vst.msk [vmem:[%s1484_s22 + $0x80] sm:$0xff] %vm272_vm0, %v926_v11  ;;  %v872_v17 = vld [vmem:[#allocation2 + $0x8] sm:$0xff]  ;;  %v689_v19 = vpop.f32.mrf.mxu0  ;;  %v753_v20 = vpop.f32.mrf.mxu1 }
 0x104   : > { %v888_v18 = vld [vmem:[#allocation2 + $0x88] sm:$0xff]  ;;  %v911_v22 = vadd.f32 %v1477_v63, %v872_v17  ;;  %839 = vst.msk [vmem:[#allocation2 + $0x18] sm:$0xff] %vm272_vm0, %v806_v14  ;;  %855 = vst.msk [vmem:[#allocation2 + $0x98] sm:$0xff] %vm272_vm0, %v822_v15 }
 0x105   : > { %v927_v23 = vadd.f32 %v1477_v63, %v888_v18  ;;  %v692_v24 = vpop.f32.mrf.mxu0  ;;  %v756_v25 = vpop.f32.mrf.mxu1  ;;  %v330_v18 = vld [vmem:[#allocation2 + $0xc8] sm:$0xff] }
 0x106   : > { %943 = vst.msk [vmem:[%s1484_s22 + $0x8] sm:$0xff] %vm272_vm0, %v911_v22  ;;  %v807_v26 = vadd.f32 %v692_v24, %v309_v16  ;;  %v823_v27 = vadd.f32 %v756_v25, %v325_v21  ;;  %v315_v25 = vld [vmem:[#allocation2 + $0x50] sm:$0xff] }
 0x107   : > { %959 = vst.msk [vmem:[%s1484_s22 + $0x88] sm:$0xff] %vm272_vm0, %v927_v23  ;;  %v873_v29 = vld [vmem:[#allocation2 + $0x10] sm:$0xff]  ;;  %v694_v31 = vpop.f32.mrf.mxu0  ;;  %v758_v32 = vpop.f32.mrf.mxu1 }
 0x108   : > { %v889_v30 = vld [vmem:[#allocation2 + $0x90] sm:$0xff]  ;;  %v912_v34 = vadd.f32 %v1477_v63, %v873_v29  ;;  %840 = vst.msk [vmem:[#allocation2 + $0x20] sm:$0xff] %vm272_vm0, %v807_v26  ;;  %856 = vst.msk [vmem:[#allocation2 + $0xa0] sm:$0xff] %vm272_vm0, %v823_v27 }
 0x109   : > { %v928_v35 = vadd.f32 %v1477_v63, %v889_v30  ;;  %v695_v36 = vpop.f32.mrf.mxu0  ;;  %v759_v37 = vpop.f32.mrf.mxu1  ;;  %v331_v30 = vld [vmem:[#allocation2 + $0xd0] sm:$0xff] }
 0x10a   : > { %944 = vst.msk [vmem:[%s1484_s22 + $0x10] sm:$0xff] %vm272_vm0, %v912_v34  ;;  %v808_v38 = vadd.f32 %v695_v36, %v310_v28  ;;  %v824_v39 = vadd.f32 %v759_v37, %v326_v33  ;;  %v316_v37 = vld [vmem:[#allocation2 + $0x58] sm:$0xff] }
 0x10b   : > { %960 = vst.msk [vmem:[%s1484_s22 + $0x90] sm:$0xff] %vm272_vm0, %v928_v35  ;;  %v874_v41 = vld [vmem:[#allocation2 + $0x18] sm:$0xff]  ;;  %v697_v43 = vpop.f32.mrf.mxu0  ;;  %v761_v44 = vpop.f32.mrf.mxu1 }
 0x10c   : > { %v890_v42 = vld [vmem:[#allocation2 + $0x98] sm:$0xff]  ;;  %v913_v46 = vadd.f32 %v1477_v63, %v874_v41  ;;  %841 = vst.msk [vmem:[#allocation2 + $0x28] sm:$0xff] %vm272_vm0, %v808_v38  ;;  %857 = vst.msk [vmem:[#allocation2 + $0xa8] sm:$0xff] %vm272_vm0, %v824_v39 }
 0x10d   : > { %v929_v47 = vadd.f32 %v1477_v63, %v890_v42  ;;  %v700_v48 = vpop.f32.mrf.mxu0  ;;  %v764_v49 = vpop.f32.mrf.mxu1  ;;  %v332_v42 = vld [vmem:[#allocation2 + $0xd8] sm:$0xff] }
 0x10e   : > { %945 = vst.msk [vmem:[%s1484_s22 + $0x18] sm:$0xff] %vm272_vm0, %v913_v46  ;;  %v809_v50 = vadd.f32 %v700_v48, %v311_v40  ;;  %v825_v51 = vadd.f32 %v764_v49, %v327_v45  ;;  %v317_v49 = vld [vmem:[#allocation2 + $0x60] sm:$0xff] }
 0x10f   : > { %961 = vst.msk [vmem:[%s1484_s22 + $0x98] sm:$0xff] %vm272_vm0, %v929_v47  ;;  %v875_v53 = vld [vmem:[#allocation2 + $0x20] sm:$0xff]  ;;  %v702_v55 = vpop.f32.mrf.mxu0  ;;  %v766_v56 = vpop.f32.mrf.mxu1 }
 0x110   : > { %v891_v54 = vld [vmem:[#allocation2 + $0xa0] sm:$0xff]  ;;  %v914_v58 = vadd.f32 %v1477_v63, %v875_v53  ;;  %842 = vst.msk [vmem:[#allocation2 + $0x30] sm:$0xff] %vm272_vm0, %v809_v50  ;;  %858 = vst.msk [vmem:[#allocation2 + $0xb0] sm:$0xff] %vm272_vm0, %v825_v51 }
 0x111   : > { %v930_v59 = vadd.f32 %v1477_v63, %v891_v54  ;;  %v703_v60 = vpop.f32.mrf.mxu0  ;;  %v767_v61 = vpop.f32.mrf.mxu1  ;;  %v333_v54 = vld [vmem:[#allocation2 + $0xe0] sm:$0xff] }
 0x112   : > { %946 = vst.msk [vmem:[%s1484_s22 + $0x20] sm:$0xff] %vm272_vm0, %v914_v58  ;;  %v810_v62 = vadd.f32 %v703_v60, %v312_v52  ;;  %v826_v0 = vadd.f32 %v767_v61, %v328_v57  ;;  %v318_v61 = vld [vmem:[#allocation2 + $0x68] sm:$0xff] }
 0x113   : > { %962 = vst.msk [vmem:[%s1484_s22 + $0xa0] sm:$0xff] %vm272_vm0, %v930_v59  ;;  %v876_v2 = vld [vmem:[#allocation2 + $0x28] sm:$0xff]  ;;  %v705_v4 = vpop.f32.mrf.mxu0  ;;  %v769_v5 = vpop.f32.mrf.mxu1 }
 0x114   : > { %v892_v3 = vld [vmem:[#allocation2 + $0xa8] sm:$0xff]  ;;  %v915_v7 = vadd.f32 %v1477_v63, %v876_v2  ;;  %843 = vst.msk [vmem:[#allocation2 + $0x38] sm:$0xff] %vm272_vm0, %v810_v62  ;;  %859 = vst.msk [vmem:[#allocation2 + $0xb8] sm:$0xff] %vm272_vm0, %v826_v0 }
 0x115   : > { %v931_v8 = vadd.f32 %v1477_v63, %v892_v3  ;;  %v708_v9 = vpop.f32.mrf.mxu0  ;;  %v772_v10 = vpop.f32.mrf.mxu1  ;;  %v334_v3 = vld [vmem:[#allocation2 + $0xe8] sm:$0xff] }
 0x116   : > { %947 = vst.msk [vmem:[%s1484_s22 + $0x28] sm:$0xff] %vm272_vm0, %v915_v7  ;;  %v811_v11 = vadd.f32 %v708_v9, %v313_v1  ;;  %v827_v12 = vadd.f32 %v772_v10, %v329_v6  ;;  %v319_v10 = vld [vmem:[#allocation2 + $0x70] sm:$0xff] }
 0x117   : > { %963 = vst.msk [vmem:[%s1484_s22 + $0xa8] sm:$0xff] %vm272_vm0, %v931_v8  ;;  %v877_v14 = vld [vmem:[#allocation2 + $0x30] sm:$0xff]  ;;  %v710_v16 = vpop.f32.mrf.mxu0  ;;  %v774_v17 = vpop.f32.mrf.mxu1 }
 0x118   : > { %v893_v15 = vld [vmem:[#allocation2 + $0xb0] sm:$0xff]  ;;  %v916_v19 = vadd.f32 %v1477_v63, %v877_v14  ;;  %844 = vst.msk [vmem:[#allocation2 + $0x40] sm:$0xff] %vm272_vm0, %v811_v11  ;;  %860 = vst.msk [vmem:[#allocation2 + $0xc0] sm:$0xff] %vm272_vm0, %v827_v12 }
 0x119   : > { %v932_v20 = vadd.f32 %v1477_v63, %v893_v15  ;;  %v711_v21 = vpop.f32.mrf.mxu0  ;;  %v775_v22 = vpop.f32.mrf.mxu1  ;;  %v335_v15 = vld [vmem:[#allocation2 + $0xf0] sm:$0xff] }
 0x11a   : > { %948 = vst.msk [vmem:[%s1484_s22 + $0x30] sm:$0xff] %vm272_vm0, %v916_v19  ;;  %v812_v23 = vadd.f32 %v711_v21, %v314_v13  ;;  %v828_v24 = vadd.f32 %v775_v22, %v330_v18  ;;  %v320_v22 = vld [vmem:[#allocation2 + $0x78] sm:$0xff] }
 0x11b   : > { %964 = vst.msk [vmem:[%s1484_s22 + $0xb0] sm:$0xff] %vm272_vm0, %v932_v20  ;;  %v878_v26 = vld [vmem:[#allocation2 + $0x38] sm:$0xff]  ;;  %v713_v28 = vpop.f32.mrf.mxu0  ;;  %v777_v29 = vpop.f32.mrf.mxu1 }
 0x11c   : > { %v894_v27 = vld [vmem:[#allocation2 + $0xb8] sm:$0xff]  ;;  %v917_v31 = vadd.f32 %v1477_v63, %v878_v26  ;;  %845 = vst.msk [vmem:[#allocation2 + $0x48] sm:$0xff] %vm272_vm0, %v812_v23  ;;  %861 = vst.msk [vmem:[#allocation2 + $0xc8] sm:$0xff] %vm272_vm0, %v828_v24 }
 0x11d   : > { %v933_v32 = vadd.f32 %v1477_v63, %v894_v27  ;;  %v716_v33 = vpop.f32.mrf.mxu0  ;;  %v780_v34 = vpop.f32.mrf.mxu1  ;;  %v336_v27 = vld [vmem:[#allocation2 + $0xf8] sm:$0xff] }
 0x11e   : > { %949 = vst.msk [vmem:[%s1484_s22 + $0x38] sm:$0xff] %vm272_vm0, %v917_v31  ;;  %v813_v35 = vadd.f32 %v716_v33, %v315_v25  ;;  %v829_v36 = vadd.f32 %v780_v34, %v331_v30 }
 0x11f   : > { %965 = vst.msk [vmem:[%s1484_s22 + $0xb8] sm:$0xff] %vm272_vm0, %v933_v32  ;;  %v879_v38 = vld [vmem:[#allocation2 + $0x40] sm:$0xff]  ;;  %v718_v40 = vpop.f32.mrf.mxu0  ;;  %v782_v41 = vpop.f32.mrf.mxu1 }
 0x120   : > { %v895_v39 = vld [vmem:[#allocation2 + $0xc0] sm:$0xff]  ;;  %v918_v43 = vadd.f32 %v1477_v63, %v879_v38  ;;  %846 = vst.msk [vmem:[#allocation2 + $0x50] sm:$0xff] %vm272_vm0, %v813_v35  ;;  %862 = vst.msk [vmem:[#allocation2 + $0xd0] sm:$0xff] %vm272_vm0, %v829_v36 }
 0x121   : > { %v934_v44 = vadd.f32 %v1477_v63, %v895_v39  ;;  %v719_v45 = vpop.f32.mrf.mxu0  ;;  %v783_v46 = vpop.f32.mrf.mxu1 }
 0x122   : > { %950 = vst.msk [vmem:[%s1484_s22 + $0x40] sm:$0xff] %vm272_vm0, %v918_v43  ;;  %v814_v47 = vadd.f32 %v719_v45, %v316_v37  ;;  %v830_v48 = vadd.f32 %v783_v46, %v332_v42 }
 0x123   : > { %966 = vst.msk [vmem:[%s1484_s22 + $0xc0] sm:$0xff] %vm272_vm0, %v934_v44  ;;  %v880_v50 = vld [vmem:[#allocation2 + $0x48] sm:$0xff]  ;;  %v721_v52 = vpop.f32.mrf.mxu0  ;;  %v785_v53 = vpop.f32.mrf.mxu1 }
 0x124   : > { %v896_v51 = vld [vmem:[#allocation2 + $0xc8] sm:$0xff]  ;;  %v919_v55 = vadd.f32 %v1477_v63, %v880_v50  ;;  %847 = vst.msk [vmem:[#allocation2 + $0x58] sm:$0xff] %vm272_vm0, %v814_v47  ;;  %863 = vst.msk [vmem:[#allocation2 + $0xd8] sm:$0xff] %vm272_vm0, %v830_v48 }
 0x125   : > { %v935_v56 = vadd.f32 %v1477_v63, %v896_v51  ;;  %v724_v57 = vpop.f32.mrf.mxu0  ;;  %v788_v58 = vpop.f32.mrf.mxu1 }
 0x126   : > { %951 = vst.msk [vmem:[%s1484_s22 + $0x48] sm:$0xff] %vm272_vm0, %v919_v55  ;;  %v815_v59 = vadd.f32 %v724_v57, %v317_v49  ;;  %v831_v60 = vadd.f32 %v788_v58, %v333_v54 }
 0x127   : > { %967 = vst.msk [vmem:[%s1484_s22 + $0xc8] sm:$0xff] %vm272_vm0, %v935_v56  ;;  %v881_v62 = vld [vmem:[#allocation2 + $0x50] sm:$0xff]  ;;  %v726_v1 = vpop.f32.mrf.mxu0  ;;  %v790_v2 = vpop.f32.mrf.mxu1 }
 0x128   : > { %v897_v0 = vld [vmem:[#allocation2 + $0xd0] sm:$0xff]  ;;  %v920_v4 = vadd.f32 %v1477_v63, %v881_v62  ;;  %848 = vst.msk [vmem:[#allocation2 + $0x60] sm:$0xff] %vm272_vm0, %v815_v59  ;;  %864 = vst.msk [vmem:[#allocation2 + $0xe0] sm:$0xff] %vm272_vm0, %v831_v60 }
 0x129   : > { %v936_v5 = vadd.f32 %v1477_v63, %v897_v0  ;;  %v727_v6 = vpop.f32.mrf.mxu0  ;;  %v791_v7 = vpop.f32.mrf.mxu1 }
 0x12a   : > { %952 = vst.msk [vmem:[%s1484_s22 + $0x50] sm:$0xff] %vm272_vm0, %v920_v4  ;;  %v816_v8 = vadd.f32 %v727_v6, %v318_v61  ;;  %v832_v9 = vadd.f32 %v791_v7, %v334_v3 }
 0x12b   : > { %968 = vst.msk [vmem:[%s1484_s22 + $0xd0] sm:$0xff] %vm272_vm0, %v936_v5  ;;  %v882_v11 = vld [vmem:[#allocation2 + $0x58] sm:$0xff]  ;;  %v729_v13 = vpop.f32.mrf.mxu0  ;;  %v793_v14 = vpop.f32.mrf.mxu1 }
 0x12c   : > { %v898_v12 = vld [vmem:[#allocation2 + $0xd8] sm:$0xff]  ;;  %v921_v16 = vadd.f32 %v1477_v63, %v882_v11  ;;  %849 = vst.msk [vmem:[#allocation2 + $0x68] sm:$0xff] %vm272_vm0, %v816_v8  ;;  %865 = vst.msk [vmem:[#allocation2 + $0xe8] sm:$0xff] %vm272_vm0, %v832_v9 }
 0x12d   : > { %v937_v17 = vadd.f32 %v1477_v63, %v898_v12  ;;  %v732_v18 = vpop.f32.mrf.mxu0  ;;  %v796_v19 = vpop.f32.mrf.mxu1 }
 0x12e   : > { %953 = vst.msk [vmem:[%s1484_s22 + $0x58] sm:$0xff] %vm272_vm0, %v921_v16  ;;  %v817_v20 = vadd.f32 %v732_v18, %v319_v10  ;;  %v833_v21 = vadd.f32 %v796_v19, %v335_v15 }
 0x12f   : > { %969 = vst.msk [vmem:[%s1484_s22 + $0xd8] sm:$0xff] %vm272_vm0, %v937_v17  ;;  %v883_v23 = vld [vmem:[#allocation2 + $0x60] sm:$0xff]  ;;  %v734_v25 = vpop.f32.mrf.mxu0  ;;  %v798_v26 = vpop.f32.mrf.mxu1 }
 0x130   : > { %v899_v24 = vld [vmem:[#allocation2 + $0xe0] sm:$0xff]  ;;  %v922_v28 = vadd.f32 %v1477_v63, %v883_v23  ;;  %850 = vst.msk [vmem:[#allocation2 + $0x70] sm:$0xff] %vm272_vm0, %v817_v20  ;;  %866 = vst.msk [vmem:[#allocation2 + $0xf0] sm:$0xff] %vm272_vm0, %v833_v21 }
 0x131   : > { %v938_v29 = vadd.f32 %v1477_v63, %v899_v24  ;;  %v735_v30 = vpop.f32.mrf.mxu0  ;;  %v799_v31 = vpop.f32.mrf.mxu1 }
 0x132   : > { %954 = vst.msk [vmem:[%s1484_s22 + $0x60] sm:$0xff] %vm272_vm0, %v922_v28  ;;  %v818_v32 = vadd.f32 %v735_v30, %v320_v22  ;;  %v834_v33 = vadd.f32 %v799_v31, %v336_v27 }
 0x133   : > { %970 = vst.msk [vmem:[%s1484_s22 + $0xe0] sm:$0xff] %vm272_vm0, %v938_v29  ;;  %v884_v34 = vld [vmem:[#allocation2 + $0x68] sm:$0xff]  ;;  %v737_v36 = vpop.f32.mrf.mxu0  ;;  %v801_v37 = vpop.f32.mrf.mxu1 }
 0x134   : > { %v900_v35 = vld [vmem:[#allocation2 + $0xe8] sm:$0xff]  ;;  %v923_v38 = vadd.f32 %v1477_v63, %v884_v34  ;;  %851 = vst.msk [vmem:[#allocation2 + $0x78] sm:$0xff] %vm272_vm0, %v818_v32  ;;  %867 = vst.msk [vmem:[#allocation2 + $0xf8] sm:$0xff] %vm272_vm0, %v834_v33 }
 0x135   : > { %v939_v39 = vadd.f32 %v1477_v63, %v900_v35 }
 0x136   : > { %955 = vst.msk [vmem:[%s1484_s22 + $0x68] sm:$0xff] %vm272_vm0, %v923_v38 }
 0x137   : > { %971 = vst.msk [vmem:[%s1484_s22 + $0xe8] sm:$0xff] %vm272_vm0, %v939_v39  ;;  %v885_v40 = vld [vmem:[#allocation2 + $0x70] sm:$0xff] }
 0x138   : > { %v901_v41 = vld [vmem:[#allocation2 + $0xf0] sm:$0xff]  ;;  %v924_v42 = vadd.f32 %v1477_v63, %v885_v40 }
 0x139   : > { %v940_v43 = vadd.f32 %v1477_v63, %v901_v41 }
 0x13a   : > { %956 = vst.msk [vmem:[%s1484_s22 + $0x70] sm:$0xff] %vm272_vm0, %v924_v42 }
 0x13b   : > { %972 = vst.msk [vmem:[%s1484_s22 + $0xf0] sm:$0xff] %vm272_vm0, %v940_v43  ;;  %v886_v44 = vld [vmem:[#allocation2 + $0x78] sm:$0xff] }
 0x13c   : > { %v902_v45 = vld [vmem:[#allocation2 + $0xf8] sm:$0xff]  ;;  %v925_v46 = vadd.f32 %v1477_v63, %v886_v44 }
 0x13d   : > { %v941_v47 = vadd.f32 %v1477_v63, %v902_v45 }
 0x13e   : > { %957 = vst.msk [vmem:[%s1484_s22 + $0x78] sm:$0xff] %vm272_vm0, %v925_v46 }
 0x13f   : > { %973 = vst.msk [vmem:[%s1484_s22 + $0xf8] sm:$0xff] %vm272_vm0, %v941_v47 }
 0x140 PF: > { %s13_s14 = sadd.s32 1, %s1288_s14   ;;  %s1623_s12 = smov %s1284_s13 }
 0x141   : > { %p10_p5 = scmp.ge.s32.totalorder %s13_s14, 4   ;;  %s1624_s13 = smov %s1626_s15 }
 0x143   :  { %12 = sbr.rel (!%p10_p5) target bundleno = 2 (0x2), region = 76 }

</bundles_post_ra>
